<compile_context>
chip_gen: v5e
topology: v5e:2x2
jax: 0.10.0
libtpu: 0.0.40
codegen_flags: <defaults>
</compile_context>

<pallas_src>
import math

import jax
import jax.numpy as jnp
from jax.experimental import pallas as pl
from jax.experimental.pallas import tpu as pltpu

LANE = 128
_VMEM = pl.BlockSpec(memory_space=pltpu.MemorySpace.VMEM)


# ----------------------------------------------------------------------------
# padding helpers (run once at pack time / on inputs; everything lane-dense)
# ----------------------------------------------------------------------------
def _pad_to(n, m):
    return ((n + m - 1) // m) * m


def _pad2d(a, rows, cols):
    r, c = a.shape
    return jnp.zeros((rows, cols), a.dtype).at[:r, :c].set(a)


def _pad_row(v, cols):
    return jnp.zeros((1, cols), jnp.float32).at[0, : v.shape[0]].set(v)


# ----------------------------------------------------------------------------
# fused kernel
# ----------------------------------------------------------------------------
def _build_fused_kernel(*, counts_relu, n_heads, attn_dim, has_proj,
                        add_relu, compute_dtype):
    n_counts = len(counts_relu)
    n_add = len(add_relu)

    def layer(act, w_ref, b_ref, relu):
        # matmul operands in compute_dtype (bf16 on v6e/v7x, f32 on v5e),
        # f32 accumulation; bias / ReLU epilogue in f32.
        y = jnp.dot(act.astype(compute_dtype), w_ref[...].astype(compute_dtype),
                    preferred_element_type=jnp.float32)
        y = y + b_ref[...]
        if relu:
            y = jnp.maximum(y, 0.0)
        return y

    def kernel(*refs):
        it = iter(refs)
        x_ref, c_ref = next(it), next(it)
        counts_refs = [(next(it), next(it)) for _ in range(n_counts)]
        wq_ref, bq_ref = next(it), next(it)
        wk_ref, bk_ref = next(it), next(it)
        wv_ref, bv_ref = next(it), next(it)
        proj_refs = (next(it), next(it)) if has_proj else None
        bn_scale_ref, bn_shift_ref = next(it), next(it)
        add_refs = [(next(it), next(it)) for _ in range(n_add)]
        o_ref = next(it)

        # ---- counts_network : DenseNeuralNetwork stack (kept in VMEM) -------
        z = x_ref[...].astype(jnp.float32)
        for (w_r, b_r), relu in zip(counts_refs, counts_relu):
            z = layer(z, w_r, b_r, relu)

        # ---- CovariatesAttentionLayer : multi-head attention over batch -----
        c = c_ref[...].astype(jnp.float32)
        # Heads are packed along the lane axis -> ONE matmul each for all
        # heads' q / k / v.  1/sqrt(attn_dim) is folded into Wq/bq.
        q_all = layer(z, wq_ref, bq_ref, False)      # (B, qk_p)
        k_all = layer(c, wk_ref, bk_ref, False)      # (B, qk_p)
        v_all = layer(c, wv_ref, bv_ref, False)      # (B, qk_p)

        qk_p = q_all.shape[-1]
        lane = jax.lax.broadcasted_iota(jnp.int32, (1, qk_p), 1)

        a = jnp.zeros_like(v_all)                    # (B, qk_p) f32 accumulator
        for h in range(n_heads):                     # static unroll, n_heads small
            m = ((lane >= h * attn_dim) &
                 (lane < (h + 1) * attn_dim)).astype(jnp.float32)   # (1, qk_p)
            # masked dot_general: zero lanes outside head h -> exact q_h k_h^T
            s = jax.lax.dot_general(q_all * m, k_all, (((1,), (1,)), ((), ())),
                                    preferred_element_type=jnp.float32)
            s = s - jnp.max(s, axis=-1, keepdims=True)
            e = jnp.exp(s)
            p = e * pl.reciprocal(jnp.sum(e, axis=-1, keepdims=True), approx=True)
            # V for every head lives in its own disjoint column block of v_all,
            # so the per-head concat is a masked accumulate of one matmul.
            a = a + jnp.dot(p, v_all, preferred_element_type=jnp.float32) * m
        if has_proj:  # only when input_dim % n_heads != 0 (else nn.Identity)
            a = layer(a, proj_refs[0], proj_refs[1], False)

        # ---- AdditiveNeuralNetwork: (Z + A) -> BatchNorm(eval) -> MLP -------
        s = z + a
        s = s * bn_scale_ref[...] + bn_shift_ref[...]   # folded BN, one FMA
        act = s
        for (w_r, b_r), relu in zip(add_refs, add_relu):
            act = layer(act, w_r, b_r, relu)

        o_ref[...] = act.astype(o_ref.dtype)

    return kernel


# ----------------------------------------------------------------------------
# parameter construction (deterministic, PyTorch-Linear-style uniform init)
# ----------------------------------------------------------------------------
def _init_linear(key, n_in, n_out):
    kw, kb = jax.random.split(key)
    bound = 1.0 / math.sqrt(n_in)
    w = jax.random.uniform(kw, (n_in, n_out), jnp.float32, -bound, bound)
    b = jax.random.uniform(kb, (n_out,), jnp.float32, -bound, bound)
    return w, b


def _dense_nn(key, input_size, hidden_size, output_size, n_layers):
    layers = []
    if n_layers == 0:
        w, b = _init_linear(key, input_size, output_size)
        return [(w, b, False)]
    keys = jax.random.split(key, n_layers + 1)
    last = input_size
    for i in range(n_layers):
        w, b = _init_linear(keys[i], last, hidden_size)
        layers.append((w, b, True))
        last = hidden_size
    w, b = _init_linear(keys[-1], last, output_size)
    layers.append((w, b, False))
    return layers


def init_raw_params(key, cfg):
    input_dim, n_heads = cfg["input_dim"], cfg["n_heads"]
    attn = input_dim // n_heads
    k_counts, k_attn, k_proj, k_bn, k_add = jax.random.split(key, 5)

    counts = _dense_nn(k_counts, cfg["x_dim"], cfg["counts_hidden"],
                       input_dim, cfg["counts_layers"])

    heads = []
    for hk in jax.random.split(k_attn, n_heads):
        kq, kk, kv = jax.random.split(hk, 3)
        wq, bq = _init_linear(kq, input_dim, attn)
        wk, bk = _init_linear(kk, cfg["covariates_dim"], attn)
        wv, bv = _init_linear(kv, cfg["covariates_dim"], attn)
        heads.append((wq, bq, wk, bk, wv, bv))

    proj = None
    if n_heads * attn != input_dim:
        proj = _init_linear(k_proj, n_heads * attn, input_dim)

    # eval-mode BatchNorm1d: learned affine + running statistics
    kg, kb2, km, kv2 = jax.random.split(k_bn, 4)
    gamma = jax.random.uniform(kg, (input_dim,), jnp.float32, 0.5, 1.5)
    beta = 0.1 * jax.random.normal(kb2, (input_dim,), jnp.float32)
    r_mean = 0.1 * jax.random.normal(km, (input_dim,), jnp.float32)
    r_var = jax.random.uniform(kv2, (input_dim,), jnp.float32, 0.5, 1.5)

    additive = _dense_nn(k_add, input_dim, cfg["output_dim"],
                         cfg["output_dim"], cfg["n_output_layers"])
    return dict(counts=counts, heads=heads, proj=proj,
                bn=(gamma, beta, r_mean, r_var), additive=additive)


def pack_params(raw, cfg, weight_dtype):
    """Pad / lane-pack all weights once, in kernel-argument order."""
    input_dim, n_heads = cfg["input_dim"], cfg["n_heads"]
    attn = input_dim // n_heads
    in_p = _pad_to(input_dim, LANE)
    cov_p = _pad_to(cfg["covariates_dim"], LANE)
    qk_p = _pad_to(n_heads * attn, LANE)

    def padw(w):
        return _pad2d(w, _pad_to(w.shape[0], LANE),
                      _pad_to(w.shape[1], LANE)).astype(weight_dtype)

    def padb(b):      # biases stay f32 (added after f32 accumulation)
        return _pad_row(b, _pad_to(b.shape[0], LANE))

    flat, counts_relu, add_relu = [], [], []
    for w, b, relu in raw["counts"]:
        flat += [padw(w), padb(b)]
        counts_relu.append(relu)

    # Pack all heads along the lane (output-column) axis: head h occupies
    # columns [h*attn, (h+1)*attn).  1/sqrt(attn) is folded into Wq/bq.
    scale = 1.0 / math.sqrt(attn)
    wq_all = jnp.zeros((in_p, qk_p), jnp.float32)
    bq_all = jnp.zeros((1, qk_p), jnp.float32)
    wk_all = jnp.zeros((cov_p, qk_p), jnp.float32)
    bk_all = jnp.zeros((1, qk_p), jnp.float32)
    wv_all = jnp.zeros((cov_p, qk_p), jnp.float32)
    bv_all = jnp.zeros((1, qk_p), jnp.float32)
    for h, (wq, bq, wk, bk, wv, bv) in enumerate(raw["heads"]):
        c0, c1 = h * attn, (h + 1) * attn
        wq_all = wq_all.at[: wq.shape[0], c0:c1].set(wq * scale)
        bq_all = bq_all.at[0, c0:c1].set(bq * scale)
        wk_all = wk_all.at[: wk.shape[0], c0:c1].set(wk)
        bk_all = bk_all.at[0, c0:c1].set(bk)
        wv_all = wv_all.at[: wv.shape[0], c0:c1].set(wv)
        bv_all = bv_all.at[0, c0:c1].set(bv)
    flat += [wq_all.astype(weight_dtype), bq_all,
             wk_all.astype(weight_dtype), bk_all,
             wv_all.astype(weight_dtype), bv_all]

    has_proj = raw["proj"] is not None
    if has_proj:
        wpr, bpr = raw["proj"]
        flat += [padw(wpr), padb(bpr)]

    gamma, beta, mean, var = raw["bn"]
    bn_scale = gamma / jnp.sqrt(var + 1e-5)
    bn_shift = beta - mean * bn_scale
    flat += [_pad_row(bn_scale, in_p), _pad_row(bn_shift, in_p)]

    for w, b, relu in raw["additive"]:
        flat += [padw(w), padb(b)]
        add_relu.append(relu)

    meta = dict(counts_relu=tuple(counts_relu), add_relu=tuple(add_relu),
                n_heads=n_heads, attn_dim=attn, has_proj=has_proj,
                xin_p=_pad_to(cfg["x_dim"], LANE), cov_p=cov_p,
                out_p=_pad_to(cfg["output_dim"], LANE))
    return flat, meta


def build_forward(flat, meta, batch, output_dim, compute_dtype):
    kernel = _build_fused_kernel(
        counts_relu=meta["counts_relu"], n_heads=meta["n_heads"],
        attn_dim=meta["attn_dim"], has_proj=meta["has_proj"],
        add_relu=meta["add_relu"], compute_dtype=compute_dtype)

    call = pl.pallas_call(
        kernel,
        out_shape=jax.ShapeDtypeStruct((batch, meta["out_p"]), jnp.float32),
        in_specs=[_VMEM] * (2 + len(flat)),
        out_specs=_VMEM,
    )
    xin_p, cov_p = meta["xin_p"], meta["cov_p"]

    def forward(X, C):
        Xp = _pad2d(X, X.shape[0], xin_p)
        Cp = _pad2d(C, C.shape[0], cov_p)
        return call(Xp, Cp, *flat)[:, :output_dim]

    return jax.jit(forward)


def _pick_compute_dtype():
    # v5e has no bf16 VPU/EUP: keep matmul operands f32 there (bf16 weights are
    # still fine for the DMA halving); v6e/v7x take the bf16 MXU fast path.
    kind = jax.devices()[0].device_kind.lower()
    if "v5" in kind:
        return jnp.float32
    return jnp.bfloat16


# ----------------------------------------------------------------------------
# pure-JAX reference (mirrors the PyTorch module, f32 throughout)
# ----------------------------------------------------------------------------
def reference_forward(raw, X, C):
    z = X
    for w, b, relu in raw["counts"]:
        z = z @ w + b
        if relu:
            z = jnp.maximum(z, 0.0)
    heads = []
    for wq, bq, wk, bk, wv, bv in raw["heads"]:
        q = z @ wq + bq
        k = C @ wk + bk
        v = C @ wv + bv
        s = (q @ k.T) / (q.shape[-1] ** 0.5)
        p = jax.nn.softmax(s, axis=1)
        heads.append(p @ v)
    a = jnp.concatenate(heads, axis=-1)
    if raw["proj"] is not None:
        wpr, bpr = raw["proj"]
        a = a @ wpr + bpr
    gamma, beta, mean, var = raw["bn"]
    s = z + a
    s = (s - mean) / jnp.sqrt(var + 1e-5) * gamma + beta
    h = s
    for w, b, relu in raw["additive"]:
        h = h @ w + b
        if relu:
            h = jnp.maximum(h, 0.0)
    return h


# ----------------------------------------------------------------------------
if __name__ == "__main__":
    cfg = dict(
        batch=8,
        x_dim=24,            # raw counts feature size fed to counts_network
        counts_hidden=48,    # hidden size inside counts_network
        counts_layers=1,
        input_dim=64,        # Z / attention / additive input width
        covariates_dim=12,
        n_heads=4,           # attention_dim = 64 // 4 = 16 -> Identity tail
        output_dim=32,
        n_output_layers=1,
    )

    root = jax.random.PRNGKey(0)
    k_params, k_x, k_c = jax.random.split(root, 3)
    raw = init_raw_params(k_params, cfg)

    X = jax.random.normal(k_x, (cfg["batch"], cfg["x_dim"]), jnp.float32)
    C = jax.random.normal(k_c, (cfg["batch"], cfg["covariates_dim"]), jnp.float32)

    ref = reference_forward(raw, X, C)

    # --- f32-weight / f32-operand path: correctness check --------------------
    # (tolerance covers the EUP approximate-reciprocal softmax denominator)
    flat32, meta32 = pack_params(raw, cfg, jnp.float32)
    fwd32 = build_forward(flat32, meta32, cfg["batch"], cfg["output_dim"],
                          jnp.float32)
    out32 = jax.block_until_ready(fwd32(X, C))
    assert out32.shape == (cfg["batch"], cfg["output_dim"])
    assert jnp.allclose(out32, ref, atol=5e-3, rtol=5e-3), "f32 kernel mismatch"

    # --- deployment path: bf16 weights (half the weight DMA), operand dtype
    #     chosen per TPU generation (bf16 on v6e/v7x, f32 on v5e) -------------
    compute_dtype = _pick_compute_dtype()
    flat16, meta16 = pack_params(raw, cfg, jnp.bfloat16)
    fwd16 = build_forward(flat16, meta16, cfg["batch"], cfg["output_dim"],
                          compute_dtype)
    out16 = jax.block_until_ready(fwd16(X, C))
    assert out16.shape == (cfg["batch"], cfg["output_dim"])
    assert bool(jnp.isfinite(out16).all())
    rel = jnp.linalg.norm(out16 - ref) / (jnp.linalg.norm(ref) + 1e-12)
    assert rel < 0.1, f"bf16-weight kernel relative error too large: {rel}"

    print("KERNEL_OK")
</pallas_src>

<mosaic_0001>
module attributes {stable_mosaic.version = 11 : i64} {
  func.func @kernel(%arg0: memref<8x128xf32, #tpu.memory_space<vmem>>, %arg1: memref<8x128xf32, #tpu.memory_space<vmem>>, %arg2: memref<128x128xf32, #tpu.memory_space<vmem>>, %arg3: memref<1x128xf32, #tpu.memory_space<vmem>>, %arg4: memref<128x128xf32, #tpu.memory_space<vmem>>, %arg5: memref<1x128xf32, #tpu.memory_space<vmem>>, %arg6: memref<128x128xf32, #tpu.memory_space<vmem>>, %arg7: memref<1x128xf32, #tpu.memory_space<vmem>>, %arg8: memref<128x128xf32, #tpu.memory_space<vmem>>, %arg9: memref<1x128xf32, #tpu.memory_space<vmem>>, %arg10: memref<128x128xf32, #tpu.memory_space<vmem>>, %arg11: memref<1x128xf32, #tpu.memory_space<vmem>>, %arg12: memref<1x128xf32, #tpu.memory_space<vmem>>, %arg13: memref<1x128xf32, #tpu.memory_space<vmem>>, %arg14: memref<128x128xf32, #tpu.memory_space<vmem>>, %arg15: memref<1x128xf32, #tpu.memory_space<vmem>>, %arg16: memref<128x128xf32, #tpu.memory_space<vmem>>, %arg17: memref<1x128xf32, #tpu.memory_space<vmem>>, %arg18: memref<8x128xf32, #tpu.memory_space<vmem>>) attributes {dimension_semantics = [], scalar_prefetch = 0 : i64, scratch_operands = 0 : i64, tpu.core_type = #tpu.core_type<tc>} {
    %c0 = arith.constant 0 : index
    %c0_0 = arith.constant 0 : index
    %0 = vector.load %arg0[%c0, %c0_0] : memref<8x128xf32, #tpu.memory_space<vmem>>, vector<8x128xf32>
    %c0_1 = arith.constant 0 : index
    %c0_2 = arith.constant 0 : index
    %1 = vector.load %arg2[%c0_1, %c0_2] : memref<128x128xf32, #tpu.memory_space<vmem>>, vector<128x128xf32>
    %cst = arith.constant dense<0.000000e+00> : vector<8x128xf32>
    %2 = tpu.matmul %0, %1, %cst {dimension_numbers = #tpu.dot_dimension_numbers<[1], [0], [0], [1], [0, 0, 1, 1], [], []>} : vector<8x128xf32>, vector<128x128xf32>, vector<8x128xf32> -> vector<8x128xf32>
    %c0_3 = arith.constant 0 : index
    %c0_4 = arith.constant 0 : index
    %3 = vector.load %arg3[%c0_3, %c0_4] : memref<1x128xf32, #tpu.memory_space<vmem>>, vector<1x128xf32>
    %4 = vector.broadcast %3 : vector<1x128xf32> to vector<8x128xf32>
    %5 = arith.addf %2, %4 : vector<8x128xf32>
    %cst_5 = arith.constant 0.000000e+00 : f32
    %6 = vector.broadcast %cst_5 : f32 to vector<8x128xf32>
    %7 = arith.maximumf %5, %6 : vector<8x128xf32>
    %c0_6 = arith.constant 0 : index
    %c0_7 = arith.constant 0 : index
    %8 = vector.load %arg4[%c0_6, %c0_7] : memref<128x128xf32, #tpu.memory_space<vmem>>, vector<128x128xf32>
    %cst_8 = arith.constant dense<0.000000e+00> : vector<8x128xf32>
    %9 = tpu.matmul %7, %8, %cst_8 {dimension_numbers = #tpu.dot_dimension_numbers<[1], [0], [0], [1], [0, 0, 1, 1], [], []>} : vector<8x128xf32>, vector<128x128xf32>, vector<8x128xf32> -> vector<8x128xf32>
    %c0_9 = arith.constant 0 : index
    %c0_10 = arith.constant 0 : index
    %10 = vector.load %arg5[%c0_9, %c0_10] : memref<1x128xf32, #tpu.memory_space<vmem>>, vector<1x128xf32>
    %11 = vector.broadcast %10 : vector<1x128xf32> to vector<8x128xf32>
    %12 = arith.addf %9, %11 : vector<8x128xf32>
    %c0_11 = arith.constant 0 : index
    %c0_12 = arith.constant 0 : index
    %13 = vector.load %arg1[%c0_11, %c0_12] : memref<8x128xf32, #tpu.memory_space<vmem>>, vector<8x128xf32>
    %c0_13 = arith.constant 0 : index
    %c0_14 = arith.constant 0 : index
    %14 = vector.load %arg6[%c0_13, %c0_14] : memref<128x128xf32, #tpu.memory_space<vmem>>, vector<128x128xf32>
    %cst_15 = arith.constant dense<0.000000e+00> : vector<8x128xf32>
    %15 = tpu.matmul %12, %14, %cst_15 {dimension_numbers = #tpu.dot_dimension_numbers<[1], [0], [0], [1], [0, 0, 1, 1], [], []>} : vector<8x128xf32>, vector<128x128xf32>, vector<8x128xf32> -> vector<8x128xf32>
    %c0_16 = arith.constant 0 : index
    %c0_17 = arith.constant 0 : index
    %16 = vector.load %arg7[%c0_16, %c0_17] : memref<1x128xf32, #tpu.memory_space<vmem>>, vector<1x128xf32>
    %17 = vector.broadcast %16 : vector<1x128xf32> to vector<8x128xf32>
    %18 = arith.addf %15, %17 : vector<8x128xf32>
    %c0_18 = arith.constant 0 : index
    %c0_19 = arith.constant 0 : index
    %19 = vector.load %arg8[%c0_18, %c0_19] : memref<128x128xf32, #tpu.memory_space<vmem>>, vector<128x128xf32>
    %cst_20 = arith.constant dense<0.000000e+00> : vector<8x128xf32>
    %20 = tpu.matmul %13, %19, %cst_20 {dimension_numbers = #tpu.dot_dimension_numbers<[1], [0], [0], [1], [0, 0, 1, 1], [], []>} : vector<8x128xf32>, vector<128x128xf32>, vector<8x128xf32> -> vector<8x128xf32>
    %c0_21 = arith.constant 0 : index
    %c0_22 = arith.constant 0 : index
    %21 = vector.load %arg9[%c0_21, %c0_22] : memref<1x128xf32, #tpu.memory_space<vmem>>, vector<1x128xf32>
    %22 = vector.broadcast %21 : vector<1x128xf32> to vector<8x128xf32>
    %23 = arith.addf %20, %22 : vector<8x128xf32>
    %c0_23 = arith.constant 0 : index
    %c0_24 = arith.constant 0 : index
    %24 = vector.load %arg10[%c0_23, %c0_24] : memref<128x128xf32, #tpu.memory_space<vmem>>, vector<128x128xf32>
    %cst_25 = arith.constant dense<0.000000e+00> : vector<8x128xf32>
    %25 = tpu.matmul %13, %24, %cst_25 {dimension_numbers = #tpu.dot_dimension_numbers<[1], [0], [0], [1], [0, 0, 1, 1], [], []>} : vector<8x128xf32>, vector<128x128xf32>, vector<8x128xf32> -> vector<8x128xf32>
    %c0_26 = arith.constant 0 : index
    %c0_27 = arith.constant 0 : index
    %26 = vector.load %arg11[%c0_26, %c0_27] : memref<1x128xf32, #tpu.memory_space<vmem>>, vector<1x128xf32>
    %27 = vector.broadcast %26 : vector<1x128xf32> to vector<8x128xf32>
    %28 = arith.addf %25, %27 : vector<8x128xf32>
    %29 = tpu.iota {dimensions = array<i32: 1>} : vector<1x128xi32>
    %cst_28 = arith.constant 0.000000e+00 : f32
    %30 = vector.broadcast %cst_28 : f32 to vector<8x128xf32>
    %c0_i32 = arith.constant 0 : i32
    %31 = vector.broadcast %c0_i32 : i32 to vector<1x128xi32>
    %32 = arith.cmpi sge, %29, %31 : vector<1x128xi32>
    %c16_i32 = arith.constant 16 : i32
    %33 = vector.broadcast %c16_i32 : i32 to vector<1x128xi32>
    %34 = arith.cmpi slt, %29, %33 : vector<1x128xi32>
    %35 = arith.andi %32, %34 : vector<1x128xi1>
    %36 = arith.extui %35 : vector<1x128xi1> to vector<1x128xi32>
    %37 = arith.sitofp %36 : vector<1x128xi32> to vector<1x128xf32>
    %38 = vector.broadcast %37 : vector<1x128xf32> to vector<8x128xf32>
    %39 = arith.mulf %18, %38 : vector<8x128xf32>
    %cst_29 = arith.constant dense<0.000000e+00> : vector<8x8xf32>
    %40 = tpu.matmul %39, %23, %cst_29 {dimension_numbers = #tpu.dot_dimension_numbers<[1], [1], [0], [0], [0, 0, 1, 0], [], []>} : vector<8x128xf32>, vector<8x128xf32>, vector<8x8xf32> -> vector<8x8xf32>
    %cst_30 = arith.constant dense<0xFF800000> : vector<8xf32>
    %41 = vector.multi_reduction <maximumf>, %40, %cst_30 [1] : vector<8x8xf32> to vector<8xf32>
    %42 = vector.shape_cast %41 : vector<8xf32> to vector<8x1xf32>
    %43 = vector.broadcast %42 : vector<8x1xf32> to vector<8x8xf32>
    %44 = arith.subf %40, %43 : vector<8x8xf32>
    %45 = math.exp %44 : vector<8x8xf32>
    %cst_31 = arith.constant dense<0.000000e+00> : vector<8xf32>
    %46 = vector.multi_reduction <add>, %45, %cst_31 [1] : vector<8x8xf32> to vector<8xf32>
    %47 = vector.shape_cast %46 : vector<8xf32> to vector<8x1xf32>
    %48 = tpu.reciprocal %47 {approx = true} : vector<8x1xf32> -> vector<8x1xf32>
    %49 = vector.broadcast %48 : vector<8x1xf32> to vector<8x8xf32>
    %50 = arith.mulf %45, %49 : vector<8x8xf32>
    %cst_32 = arith.constant dense<0.000000e+00> : vector<8x128xf32>
    %51 = tpu.matmul %50, %28, %cst_32 {dimension_numbers = #tpu.dot_dimension_numbers<[1], [0], [0], [1], [0, 0, 1, 1], [], []>} : vector<8x8xf32>, vector<8x128xf32>, vector<8x128xf32> -> vector<8x128xf32>
    %52 = vector.broadcast %37 : vector<1x128xf32> to vector<8x128xf32>
    %53 = arith.mulf %51, %52 : vector<8x128xf32>
    %54 = arith.addf %30, %53 : vector<8x128xf32>
    %c16_i32_33 = arith.constant 16 : i32
    %55 = vector.broadcast %c16_i32_33 : i32 to vector<1x128xi32>
    %56 = arith.cmpi sge, %29, %55 : vector<1x128xi32>
    %c32_i32 = arith.constant 32 : i32
    %57 = vector.broadcast %c32_i32 : i32 to vector<1x128xi32>
    %58 = arith.cmpi slt, %29, %57 : vector<1x128xi32>
    %59 = arith.andi %56, %58 : vector<1x128xi1>
    %60 = arith.extui %59 : vector<1x128xi1> to vector<1x128xi32>
    %61 = arith.sitofp %60 : vector<1x128xi32> to vector<1x128xf32>
    %62 = vector.broadcast %61 : vector<1x128xf32> to vector<8x128xf32>
    %63 = arith.mulf %18, %62 : vector<8x128xf32>
    %cst_34 = arith.constant dense<0.000000e+00> : vector<8x8xf32>
    %64 = tpu.matmul %63, %23, %cst_34 {dimension_numbers = #tpu.dot_dimension_numbers<[1], [1], [0], [0], [0, 0, 1, 0], [], []>} : vector<8x128xf32>, vector<8x128xf32>, vector<8x8xf32> -> vector<8x8xf32>
    %cst_35 = arith.constant dense<0xFF800000> : vector<8xf32>
    %65 = vector.multi_reduction <maximumf>, %64, %cst_35 [1] : vector<8x8xf32> to vector<8xf32>
    %66 = vector.shape_cast %65 : vector<8xf32> to vector<8x1xf32>
    %67 = vector.broadcast %66 : vector<8x1xf32> to vector<8x8xf32>
    %68 = arith.subf %64, %67 : vector<8x8xf32>
    %69 = math.exp %68 : vector<8x8xf32>
    %cst_36 = arith.constant dense<0.000000e+00> : vector<8xf32>
    %70 = vector.multi_reduction <add>, %69, %cst_36 [1] : vector<8x8xf32> to vector<8xf32>
    %71 = vector.shape_cast %70 : vector<8xf32> to vector<8x1xf32>
    %72 = tpu.reciprocal %71 {approx = true} : vector<8x1xf32> -> vector<8x1xf32>
    %73 = vector.broadcast %72 : vector<8x1xf32> to vector<8x8xf32>
    %74 = arith.mulf %69, %73 : vector<8x8xf32>
    %cst_37 = arith.constant dense<0.000000e+00> : vector<8x128xf32>
    %75 = tpu.matmul %74, %28, %cst_37 {dimension_numbers = #tpu.dot_dimension_numbers<[1], [0], [0], [1], [0, 0, 1, 1], [], []>} : vector<8x8xf32>, vector<8x128xf32>, vector<8x128xf32> -> vector<8x128xf32>
    %76 = vector.broadcast %61 : vector<1x128xf32> to vector<8x128xf32>
    %77 = arith.mulf %75, %76 : vector<8x128xf32>
    %78 = arith.addf %54, %77 : vector<8x128xf32>
    %c32_i32_38 = arith.constant 32 : i32
    %79 = vector.broadcast %c32_i32_38 : i32 to vector<1x128xi32>
    %80 = arith.cmpi sge, %29, %79 : vector<1x128xi32>
    %c48_i32 = arith.constant 48 : i32
    %81 = vector.broadcast %c48_i32 : i32 to vector<1x128xi32>
    %82 = arith.cmpi slt, %29, %81 : vector<1x128xi32>
    %83 = arith.andi %80, %82 : vector<1x128xi1>
    %84 = arith.extui %83 : vector<1x128xi1> to vector<1x128xi32>
    %85 = arith.sitofp %84 : vector<1x128xi32> to vector<1x128xf32>
    %86 = vector.broadcast %85 : vector<1x128xf32> to vector<8x128xf32>
    %87 = arith.mulf %18, %86 : vector<8x128xf32>
    %cst_39 = arith.constant dense<0.000000e+00> : vector<8x8xf32>
    %88 = tpu.matmul %87, %23, %cst_39 {dimension_numbers = #tpu.dot_dimension_numbers<[1], [1], [0], [0], [0, 0, 1, 0], [], []>} : vector<8x128xf32>, vector<8x128xf32>, vector<8x8xf32> -> vector<8x8xf32>
    %cst_40 = arith.constant dense<0xFF800000> : vector<8xf32>
    %89 = vector.multi_reduction <maximumf>, %88, %cst_40 [1] : vector<8x8xf32> to vector<8xf32>
    %90 = vector.shape_cast %89 : vector<8xf32> to vector<8x1xf32>
    %91 = vector.broadcast %90 : vector<8x1xf32> to vector<8x8xf32>
    %92 = arith.subf %88, %91 : vector<8x8xf32>
    %93 = math.exp %92 : vector<8x8xf32>
    %cst_41 = arith.constant dense<0.000000e+00> : vector<8xf32>
    %94 = vector.multi_reduction <add>, %93, %cst_41 [1] : vector<8x8xf32> to vector<8xf32>
    %95 = vector.shape_cast %94 : vector<8xf32> to vector<8x1xf32>
    %96 = tpu.reciprocal %95 {approx = true} : vector<8x1xf32> -> vector<8x1xf32>
    %97 = vector.broadcast %96 : vector<8x1xf32> to vector<8x8xf32>
    %98 = arith.mulf %93, %97 : vector<8x8xf32>
    %cst_42 = arith.constant dense<0.000000e+00> : vector<8x128xf32>
    %99 = tpu.matmul %98, %28, %cst_42 {dimension_numbers = #tpu.dot_dimension_numbers<[1], [0], [0], [1], [0, 0, 1, 1], [], []>} : vector<8x8xf32>, vector<8x128xf32>, vector<8x128xf32> -> vector<8x128xf32>
    %100 = vector.broadcast %85 : vector<1x128xf32> to vector<8x128xf32>
    %101 = arith.mulf %99, %100 : vector<8x128xf32>
    %102 = arith.addf %78, %101 : vector<8x128xf32>
    %c48_i32_43 = arith.constant 48 : i32
    %103 = vector.broadcast %c48_i32_43 : i32 to vector<1x128xi32>
    %104 = arith.cmpi sge, %29, %103 : vector<1x128xi32>
    %c64_i32 = arith.constant 64 : i32
    %105 = vector.broadcast %c64_i32 : i32 to vector<1x128xi32>
    %106 = arith.cmpi slt, %29, %105 : vector<1x128xi32>
    %107 = arith.andi %104, %106 : vector<1x128xi1>
    %108 = arith.extui %107 : vector<1x128xi1> to vector<1x128xi32>
    %109 = arith.sitofp %108 : vector<1x128xi32> to vector<1x128xf32>
    %110 = vector.broadcast %109 : vector<1x128xf32> to vector<8x128xf32>
    %111 = arith.mulf %18, %110 : vector<8x128xf32>
    %cst_44 = arith.constant dense<0.000000e+00> : vector<8x8xf32>
    %112 = tpu.matmul %111, %23, %cst_44 {dimension_numbers = #tpu.dot_dimension_numbers<[1], [1], [0], [0], [0, 0, 1, 0], [], []>} : vector<8x128xf32>, vector<8x128xf32>, vector<8x8xf32> -> vector<8x8xf32>
    %cst_45 = arith.constant dense<0xFF800000> : vector<8xf32>
    %113 = vector.multi_reduction <maximumf>, %112, %cst_45 [1] : vector<8x8xf32> to vector<8xf32>
    %114 = vector.shape_cast %113 : vector<8xf32> to vector<8x1xf32>
    %115 = vector.broadcast %114 : vector<8x1xf32> to vector<8x8xf32>
    %116 = arith.subf %112, %115 : vector<8x8xf32>
    %117 = math.exp %116 : vector<8x8xf32>
    %cst_46 = arith.constant dense<0.000000e+00> : vector<8xf32>
    %118 = vector.multi_reduction <add>, %117, %cst_46 [1] : vector<8x8xf32> to vector<8xf32>
    %119 = vector.shape_cast %118 : vector<8xf32> to vector<8x1xf32>
    %120 = tpu.reciprocal %119 {approx = true} : vector<8x1xf32> -> vector<8x1xf32>
    %121 = vector.broadcast %120 : vector<8x1xf32> to vector<8x8xf32>
    %122 = arith.mulf %117, %121 : vector<8x8xf32>
    %cst_47 = arith.constant dense<0.000000e+00> : vector<8x128xf32>
    %123 = tpu.matmul %122, %28, %cst_47 {dimension_numbers = #tpu.dot_dimension_numbers<[1], [0], [0], [1], [0, 0, 1, 1], [], []>} : vector<8x8xf32>, vector<8x128xf32>, vector<8x128xf32> -> vector<8x128xf32>
    %124 = vector.broadcast %109 : vector<1x128xf32> to vector<8x128xf32>
    %125 = arith.mulf %123, %124 : vector<8x128xf32>
    %126 = arith.addf %102, %125 : vector<8x128xf32>
    %127 = arith.addf %12, %126 : vector<8x128xf32>
    %c0_48 = arith.constant 0 : index
    %c0_49 = arith.constant 0 : index
    %128 = vector.load %arg12[%c0_48, %c0_49] : memref<1x128xf32, #tpu.memory_space<vmem>>, vector<1x128xf32>
    %129 = vector.broadcast %128 : vector<1x128xf32> to vector<8x128xf32>
    %130 = arith.mulf %127, %129 : vector<8x128xf32>
    %c0_50 = arith.constant 0 : index
    %c0_51 = arith.constant 0 : index
    %131 = vector.load %arg13[%c0_50, %c0_51] : memref<1x128xf32, #tpu.memory_space<vmem>>, vector<1x128xf32>
    %132 = vector.broadcast %131 : vector<1x128xf32> to vector<8x128xf32>
    %133 = arith.addf %130, %132 : vector<8x128xf32>
    %c0_52 = arith.constant 0 : index
    %c0_53 = arith.constant 0 : index
    %134 = vector.load %arg14[%c0_52, %c0_53] : memref<128x128xf32, #tpu.memory_space<vmem>>, vector<128x128xf32>
    %cst_54 = arith.constant dense<0.000000e+00> : vector<8x128xf32>
    %135 = tpu.matmul %133, %134, %cst_54 {dimension_numbers = #tpu.dot_dimension_numbers<[1], [0], [0], [1], [0, 0, 1, 1], [], []>} : vector<8x128xf32>, vector<128x128xf32>, vector<8x128xf32> -> vector<8x128xf32>
    %c0_55 = arith.constant 0 : index
    %c0_56 = arith.constant 0 : index
    %136 = vector.load %arg15[%c0_55, %c0_56] : memref<1x128xf32, #tpu.memory_space<vmem>>, vector<1x128xf32>
    %137 = vector.broadcast %136 : vector<1x128xf32> to vector<8x128xf32>
    %138 = arith.addf %135, %137 : vector<8x128xf32>
    %cst_57 = arith.constant 0.000000e+00 : f32
    %139 = vector.broadcast %cst_57 : f32 to vector<8x128xf32>
    %140 = arith.maximumf %138, %139 : vector<8x128xf32>
    %c0_58 = arith.constant 0 : index
    %c0_59 = arith.constant 0 : index
    %141 = vector.load %arg16[%c0_58, %c0_59] : memref<128x128xf32, #tpu.memory_space<vmem>>, vector<128x128xf32>
    %cst_60 = arith.constant dense<0.000000e+00> : vector<8x128xf32>
    %142 = tpu.matmul %140, %141, %cst_60 {dimension_numbers = #tpu.dot_dimension_numbers<[1], [0], [0], [1], [0, 0, 1, 1], [], []>} : vector<8x128xf32>, vector<128x128xf32>, vector<8x128xf32> -> vector<8x128xf32>
    %c0_61 = arith.constant 0 : index
    %c0_62 = arith.constant 0 : index
    %143 = vector.load %arg17[%c0_61, %c0_62] : memref<1x128xf32, #tpu.memory_space<vmem>>, vector<1x128xf32>
    %144 = vector.broadcast %143 : vector<1x128xf32> to vector<8x128xf32>
    %145 = arith.addf %142, %144 : vector<8x128xf32>
    %c0_63 = arith.constant 0 : index
    %c0_64 = arith.constant 0 : index
    %146 = vector.load %arg18[%c0_63, %c0_64] : memref<8x128xf32, #tpu.memory_space<vmem>>, vector<8x128xf32>
    tpu.vector_store %arg18[%c0_63, %c0_64], %145 {strides = array<i32>} : memref<8x128xf32, #tpu.memory_space<vmem>>, vector<8x128xf32>,
    return
  }
}

</mosaic_0001>

<bundles_post_ra>
// kernel: forward.1
= control target key start
LH: loop header
LB: loop body
LE: loop exit
PB: predicated region body
PF: predicated region fallthrough
CT: control target
= control target key end

     0   :  { %s1201_s0 = inlined_call_operand.vmem [shape: f32[8,128], index: 0, kind: input, shape index: {}]   ;;  %s1202_s1 = inlined_call_operand.vmem [shape: f32[8,128], index: 1, kind: input, shape index: {}]   ;;  %s1203_s2 = inlined_call_operand.hbm [shape: f32[128,128], index: 2, kind: input, shape index: {}]   ;;  %s1204_s3 = inlined_call_operand.vmem [shape: f32[1,128], index: 3, kind: input, shape index: {}]   ;;  %s1205_s4 = inlined_call_operand.hbm [shape: f32[128,128], index: 4, kind: input, shape index: {}]   ;;  %s1206_s5 = inlined_call_operand.vmem [shape: f32[1,128], index: 5, kind: input, shape index: {}]   ;;  %s1207_s6 = inlined_call_operand.hbm [shape: f32[128,128], index: 6, kind: input, shape index: {}]   ;;  %s1208_s7 = inlined_call_operand.vmem [shape: f32[1,128], index: 7, kind: input, shape index: {}]   ;;  %s1209_s8 = inlined_call_operand.hbm [shape: f32[128,128], index: 8, kind: input, shape index: {}]   ;;  %s1210_s9 = inlined_call_operand.vmem [shape: f32[1,128], index: 9, kind: input, shape index: {}]   ;;  %s1211_s10 = inlined_call_operand.hbm [shape: f32[128,128], index: 10, kind: input, shape index: {}]   ;;  %s1212_s11 = inlined_call_operand.vmem [shape: f32[1,128], index: 11, kind: input, shape index: {}]   ;;  %s1213_s12 = inlined_call_operand.vmem [shape: f32[1,128], index: 12, kind: input, shape index: {}]   ;;  %s1214_s13 = inlined_call_operand.vmem [shape: f32[1,128], index: 13, kind: input, shape index: {}]   ;;  %s1215_s14 = inlined_call_operand.hbm [shape: f32[128,128], index: 14, kind: input, shape index: {}]   ;;  %s1216_s15 = inlined_call_operand.vmem [shape: f32[1,128], index: 15, kind: input, shape index: {}]   ;;  %s1217_s16 = inlined_call_operand.hbm [shape: f32[128,128], index: 16, kind: input, shape index: {}]   ;;  %s1218_s17 = inlined_call_operand.vmem [shape: f32[1,128], index: 17, kind: input, shape index: {}]   ;;  %s1219_s18 = inlined_call_operand.hbm [shape: f32[8,128], index: 18, kind: output, shape index: {}]  }
   0x1   :  { %1220 = sst [smem:[#allocation20_spill]] %s1201_s0 }
   0x2   :  { %1221 = sst [smem:[#allocation21_spill]] %s1202_s1 }
   0x3   :  { %1222 = sst [smem:[#allocation22_spill]] %s1203_s2 }
   0x4   :  { %23 = vsyncpa [#allocation3], 0 }
   0x5   :  { %24 = vsyncpa [#allocation6], 0 }
   0x6   :  { %25 = vsyncpa [#allocation9], 0 }
   0x7   :  { %26 = vsyncpa [#allocation12], 0 }
   0x8   :  { %27 = vsyncpa [#allocation4], 0  ;;  %s51_s29 = sshll.u32 %s1205_s4, 4  ;;  %s982_s30 = smov [#allocation5]   ;;  %s52_s29 = int_to_ptr.hbm [resolvable:$true] %s51_s29 }
   0x9   :  { %s53_s0 = sshll.u32 %s982_s30, 4  ;;  %s81_s20 = sshll.u32 %s1209_s8, 4  ;;  %s54_s0 = int_to_ptr.vmem [resolvable:$true] %s53_s0  ;;  %s82_s20 = int_to_ptr.hbm [resolvable:$true] %s81_s20 }
   0xa   :  { %s983_s21 = smov 128   ;;  %s984_s22 = smov 8  }
   0xb   :  { %59 = dma.hbm_to_vmem [thread:$0]  %s52_s29, 2048, %s54_s0, [#allocation6], %s983_s21, %s983_s21, %s984_s22  }
   0xc   :  { %s985_s2 = smov [#allocation8]   ;;  %s115_s4 = sshll.u32 %s1215_s14, 4  ;;  %s116_s4 = int_to_ptr.hbm [resolvable:$true] %s115_s4 }
   0xd   :  { %s83_s23 = sshll.u32 %s985_s2, 4  ;;  %s1223_s27 = sld [smem:[#allocation22_spill]]  ;;  %s84_s23 = int_to_ptr.vmem [resolvable:$true] %s83_s23 }
   0xe   :  { %89 = dma.hbm_to_vmem [thread:$0]  %s82_s20, 2048, %s84_s23, [#allocation9], %s983_s21, %s983_s21, %s984_s22  }
   0xf   :  { %s986_s30 = smov [#allocation11]   ;;  %s987_s29 = smov [#allocation2]  }
  0x10   :  { %s117_s19 = sshll.u32 %s986_s30, 4  ;;  %s38_s14 = sshll.u32 %s987_s29, 4  ;;  %s118_s19 = int_to_ptr.vmem [resolvable:$true] %s117_s19  ;;  %s39_s14 = int_to_ptr.vmem [resolvable:$true] %s38_s14 }
  0x11   :  { %123 = dma.hbm_to_vmem [thread:$0]  %s116_s4, 2048, %s118_s19, [#allocation12], %s983_s21, %s983_s21, %s984_s22  }
  0x12   :  { %s66_s2 = sshll.u32 %s1207_s6, 4  ;;  %s96_s24 = sshll.u32 %s1211_s10, 4  ;;  %s67_s2 = int_to_ptr.hbm [resolvable:$true] %s66_s2  ;;  %s97_s24 = int_to_ptr.hbm [resolvable:$true] %s96_s24 }
  0x13   :  { %s36_s28 = sshll.u32 %s1223_s27, 4  ;;  %s988_s25 = smov [#allocation7]   ;;  %s37_s28 = int_to_ptr.hbm [resolvable:$true] %s36_s28 }
  0x14   :  { %44 = dma.hbm_to_vmem [thread:$0]  %s37_s28, 2048, %s39_s14, [#allocation3], %s983_s21, %s983_s21, %s984_s22  }
  0x15   :  { %s68_s8 = sshll.u32 %s988_s25, 4  ;;  %s989_s4 = smov [#allocation10]   ;;  %s69_s8 = int_to_ptr.vmem [resolvable:$true] %s68_s8 }
  0x16   :  { %74 = dma.hbm_to_vmem [thread:$0]  %s67_s2, 2048, %s69_s8, [#allocation6], %s983_s21, %s983_s21, %s984_s22  }
  0x17   :  { %s98_s6 = sshll.u32 %s989_s4, 4  ;;  %s130_s30 = sshll.u32 %s1217_s16, 4  ;;  %s99_s6 = int_to_ptr.vmem [resolvable:$true] %s98_s6  ;;  %s131_s30 = int_to_ptr.hbm [resolvable:$true] %s130_s30 }
  0x18   :  { %104 = dma.hbm_to_vmem [thread:$0]  %s97_s24, 2048, %s99_s6, [#allocation9], %s983_s21, %s983_s21, %s984_s22  }
  0x19   :  { %s990_s10 = smov [#allocation13]  }
  0x1a   :  { %s132_s28 = sshll.u32 %s990_s10, 4  ;;  %s133_s28 = int_to_ptr.vmem [resolvable:$true] %s132_s28 }
  0x1b   :  { %138 = dma.hbm_to_vmem [thread:$0]  %s131_s30, 2048, %s133_s28, [#allocation12], %s983_s21, %s983_s21, %s984_s22  }
  0x1c   :  { %972 = dma.done.wait [#allocation3], 2048  }
  0x1d   :  { %973 = vsyncadd [#allocation3], 4294965248 }
  0x1e   :  { %974 = dma.done.wait [#allocation6], 4096  }
  0x1f   :  { %975 = vsyncadd [#allocation6], 4294963200 }
  0x20   :  { %976 = dma.done.wait [#allocation9], 4096  }
  0x21   :  { %977 = vsyncadd [#allocation9], 4294963200 }
  0x22   :  { %978 = dma.done.wait [#allocation12], 4096  }
  0x23   :  { %979 = vsyncadd [#allocation12], 4294963200  ;;  %v185_v0 = vld [vmem:[#allocation2 + $0x78] sm:$0xff]  ;;  %v184_v1 = vld [vmem:[#allocation2 + $0x70] sm:$0xff]  ;;  %s1224_s22 = sld [smem:[#allocation20_spill]]  ;;  %vm400_vm10 = vcmask 64512  }
  0x24   :  { %190 = vmatpush.msra.mxu0 %v185_v0  ;;  %v183_v2 = vld [vmem:[#allocation2 + $0x68] sm:$0xff]  ;;  %v182_v3 = vld [vmem:[#allocation2 + $0x60] sm:$0xff]  ;;  %v226_v4 = vld [vmem:[#allocation5 + $0x78] sm:$0xff]  ;;  %s1225_s1 = sld [smem:[#allocation21_spill]]  ;;  %s723_s16 = sshll.u32 %s1219_s18, 4  ;;  %s724_s16 = int_to_ptr.hbm [resolvable:$true] %s723_s16 }
  0x25   :  { %v181_v5 = vld [vmem:[#allocation2 + $0x58] sm:$0xff]  ;;  %231 = vmatpush.msra.mxu1 %v226_v4  ;;  %v225_v6 = vld [vmem:[#allocation5 + $0x70] sm:$0xff]  ;;  %v224_v7 = vld [vmem:[#allocation5 + $0x68] sm:$0xff] }
  0x26   :  { %191 = vmatpush.msra.mxu0 %v184_v1  ;;  %v180_v8 = vld [vmem:[#allocation2 + $0x50] sm:$0xff]  ;;  %v179_v9 = vld [vmem:[#allocation2 + $0x48] sm:$0xff]  ;;  %v223_v10 = vld [vmem:[#allocation5 + $0x60] sm:$0xff] }
  0x27   :  { %232 = vmatpush.msra.mxu1 %v225_v6  ;;  %v178_v11 = vld [vmem:[#allocation2 + $0x40] sm:$0xff]  ;;  %v222_v12 = vld [vmem:[#allocation5 + $0x58] sm:$0xff]  ;;  %v221_v13 = vld [vmem:[#allocation5 + $0x50] sm:$0xff] }
  0x28   :  { %192 = vmatpush.msra.mxu0 %v183_v2  ;;  %v177_v14 = vld [vmem:[#allocation2 + $0x38] sm:$0xff]  ;;  %v220_v15 = vld [vmem:[#allocation5 + $0x48] sm:$0xff]  ;;  %v176_v16 = vld [vmem:[#allocation2 + $0x30] sm:$0xff] }
  0x29   :  { %233 = vmatpush.msra.mxu1 %v224_v7  ;;  %v219_v17 = vld [vmem:[#allocation5 + $0x40] sm:$0xff]  ;;  %v175_v18 = vld [vmem:[#allocation2 + $0x28] sm:$0xff]  ;;  %v218_v19 = vld [vmem:[#allocation5 + $0x38] sm:$0xff] }
  0x2a   :  { %193 = vmatpush.msra.mxu0 %v182_v3  ;;  %v174_v20 = vld [vmem:[#allocation2 + $0x20] sm:$0xff]  ;;  %v217_v21 = vld [vmem:[#allocation5 + $0x30] sm:$0xff]  ;;  %v173_v22 = vld [vmem:[#allocation2 + $0x18] sm:$0xff] }
  0x2b   :  { %234 = vmatpush.msra.mxu1 %v223_v10  ;;  %v216_v23 = vld [vmem:[#allocation5 + $0x28] sm:$0xff]  ;;  %v172_v24 = vld [vmem:[#allocation2 + $0x10] sm:$0xff]  ;;  %v215_v25 = vld [vmem:[#allocation5 + $0x20] sm:$0xff] }
  0x2c   :  { %194 = vmatpush.msra.mxu0 %v181_v5  ;;  %v171_v26 = vld [vmem:[#allocation2 + $0x8] sm:$0xff]  ;;  %v214_v27 = vld [vmem:[#allocation5 + $0x18] sm:$0xff]  ;;  %v170_v28 = vld [vmem:[#allocation2] sm:$0xff] }
  0x2d   :  { %235 = vmatpush.msra.mxu1 %v222_v12  ;;  %v169_v29 = vld [vmem:[%s1224_s22] sm:$0xff]  ;;  %v213_v30 = vld [vmem:[#allocation5 + $0x10] sm:$0xff]  ;;  %v212_v31 = vld [vmem:[#allocation5 + $0x8] sm:$0xff] }
  0x2e   :  { %195 = vmatpush.msra.mxu0 %v180_v8  ;;  %v211_v32 = vld [vmem:[#allocation5] sm:$0xff]  ;;  %v307_v33 = vld [vmem:[#allocation8 + $0x78] sm:$0xff]  ;;  %v306_v34 = vld [vmem:[#allocation8 + $0x70] sm:$0xff] }
  0x2f   :  { %236 = vmatpush.msra.mxu1 %v221_v13  ;;  %312 = vmatpush.msra.mxu3 %v307_v33  ;;  %v267_v35 = vld [vmem:[#allocation7 + $0x78] sm:$0xff]  ;;  %v266_v36 = vld [vmem:[#allocation7 + $0x70] sm:$0xff]  ;;  %v305_v37 = vld [vmem:[#allocation8 + $0x68] sm:$0xff]  ;;  %v991_v33 = vmov 0.0  }
  0x30   :  { %196 = vmatpush.msra.mxu0 %v179_v9  ;;  %272 = vmatpush.msra.mxu2 %v267_v35  ;;  %v265_v38 = vld [vmem:[#allocation7 + $0x68] sm:$0xff]  ;;  %v347_v39 = vld [vmem:[#allocation10 + $0x78] sm:$0xff]  ;;  %v304_v40 = vld [vmem:[#allocation8 + $0x60] sm:$0xff] }
  0x31   :  { %237 = vmatpush.msra.mxu1 %v220_v15  ;;  %313 = vmatpush.msra.mxu3 %v306_v34  ;;  %v346_v41 = vld [vmem:[#allocation10 + $0x70] sm:$0xff]  ;;  %v264_v42 = vld [vmem:[#allocation7 + $0x60] sm:$0xff]  ;;  %v345_v43 = vld [vmem:[#allocation10 + $0x68] sm:$0xff] }
  0x32   :  { %197 = vmatpush.msra.mxu0 %v178_v11  ;;  %273 = vmatpush.msra.mxu2 %v266_v36  ;;  %v303_v44 = vld [vmem:[#allocation8 + $0x58] sm:$0xff]  ;;  %v344_v46 = vld [vmem:[#allocation10 + $0x60] sm:$0xff]  ;;  %v302_v47 = vld [vmem:[#allocation8 + $0x50] sm:$0xff] }
  0x33   :  { %238 = vmatpush.msra.mxu1 %v219_v17  ;;  %314 = vmatpush.msra.mxu3 %v305_v37  ;;  %v263_v45 = vld [vmem:[#allocation7 + $0x58] sm:$0xff]  ;;  %v262_v48 = vld [vmem:[#allocation7 + $0x50] sm:$0xff]  ;;  %v301_v50 = vld [vmem:[#allocation8 + $0x48] sm:$0xff] }
  0x34   :  { %198 = vmatpush.msra.mxu0 %v177_v14  ;;  %274 = vmatpush.msra.mxu2 %v265_v38  ;;  %v343_v49 = vld [vmem:[#allocation10 + $0x58] sm:$0xff]  ;;  %v261_v51 = vld [vmem:[#allocation7 + $0x48] sm:$0xff]  ;;  %v342_v52 = vld [vmem:[#allocation10 + $0x50] sm:$0xff] }
  0x35   :  { %239 = vmatpush.msra.mxu1 %v218_v19  ;;  %315 = vmatpush.msra.mxu3 %v304_v40  ;;  %v300_v53 = vld [vmem:[#allocation8 + $0x40] sm:$0xff]  ;;  %v341_v55 = vld [vmem:[#allocation10 + $0x48] sm:$0xff]  ;;  %v299_v56 = vld [vmem:[#allocation8 + $0x38] sm:$0xff] }
  0x36   :  { %199 = vmatpush.msra.mxu0 %v176_v16  ;;  %275 = vmatpush.msra.mxu2 %v264_v42  ;;  %v260_v54 = vld [vmem:[#allocation7 + $0x40] sm:$0xff]  ;;  %v259_v57 = vld [vmem:[#allocation7 + $0x38] sm:$0xff]  ;;  %v298_v59 = vld [vmem:[#allocation8 + $0x30] sm:$0xff] }
  0x37   :  { %240 = vmatpush.msra.mxu1 %v217_v21  ;;  %316 = vmatpush.msra.mxu3 %v303_v44  ;;  %v340_v58 = vld [vmem:[#allocation10 + $0x40] sm:$0xff]  ;;  %v258_v60 = vld [vmem:[#allocation7 + $0x30] sm:$0xff]  ;;  %v339_v61 = vld [vmem:[#allocation10 + $0x38] sm:$0xff] }
  0x38   :  { %200 = vmatpush.msra.mxu0 %v175_v18  ;;  %276 = vmatpush.msra.mxu2 %v263_v45  ;;  %v297_v62 = vld [vmem:[#allocation8 + $0x28] sm:$0xff]  ;;  %v338_v0 = vld [vmem:[#allocation10 + $0x30] sm:$0xff]  ;;  %v296_v1 = vld [vmem:[#allocation8 + $0x20] sm:$0xff] }
  0x39   :  { %241 = vmatpush.msra.mxu1 %v216_v23  ;;  %317 = vmatpush.msra.mxu3 %v302_v47  ;;  %v257_v63 = vld [vmem:[#allocation7 + $0x28] sm:$0xff]  ;;  %v256_v2 = vld [vmem:[#allocation7 + $0x20] sm:$0xff]  ;;  %v295_v4 = vld [vmem:[#allocation8 + $0x18] sm:$0xff] }
  0x3a   :  { %201 = vmatpush.msra.mxu0 %v174_v20  ;;  %277 = vmatpush.msra.mxu2 %v262_v48  ;;  %v337_v3 = vld [vmem:[#allocation10 + $0x28] sm:$0xff]  ;;  %v255_v5 = vld [vmem:[#allocation7 + $0x18] sm:$0xff]  ;;  %v755_v6 = vld [vmem:[%s1204_s3] ss:$0 sm:$0xff] }
  0x3b   :  { %242 = vmatpush.msra.mxu1 %v215_v25  ;;  %318 = vmatpush.msra.mxu3 %v301_v50  ;;  %v294_v7 = vld [vmem:[#allocation8 + $0x10] sm:$0xff]  ;;  %v293_v9 = vld [vmem:[#allocation8 + $0x8] sm:$0xff]  ;;  %v292_v12 = vld [vmem:[#allocation8] sm:$0xff] }
  0x3c   :  { %202 = vmatpush.msra.mxu0 %v173_v22  ;;  %278 = vmatpush.msra.mxu2 %v261_v51  ;;  %v254_v8 = vld [vmem:[#allocation7 + $0x10] sm:$0xff]  ;;  %v251_v13 = vld [vmem:[%s1225_s1] sm:$0xff]  ;;  %v253_v15 = vld [vmem:[#allocation7 + $0x8] sm:$0xff] }
  0x3d   :  { %243 = vmatpush.msra.mxu1 %v214_v27  ;;  %319 = vmatpush.msra.mxu3 %v300_v53  ;;  %v336_v16 = vld [vmem:[#allocation10 + $0x20] sm:$0xff]  ;;  %v335_v18 = vld [vmem:[#allocation10 + $0x18] sm:$0xff]  ;;  %v334_v19 = vld [vmem:[#allocation10 + $0x10] sm:$0xff] }
  0x3e   :  { %203 = vmatpush.msra.mxu0 %v172_v24  ;;  %279 = vmatpush.msra.mxu2 %v260_v54  ;;  %v252_v17 = vld [vmem:[#allocation7] sm:$0xff]  ;;  %v333_v20 = vld [vmem:[#allocation10 + $0x8] sm:$0xff] }
  0x3f   :  { %244 = vmatpush.msra.mxu1 %v213_v30  ;;  %320 = vmatpush.msra.mxu3 %v299_v56  ;;  %v332_v21 = vld [vmem:[#allocation10] sm:$0xff] }
  0x40   :  { %204 = vmatpush.msra.mxu0 %v171_v26  ;;  %280 = vmatpush.msra.mxu2 %v259_v57  ;;  %v756_v22 = vld [vmem:[%s1206_s5] ss:$0 sm:$0xff] }
  0x41   :  { %245 = vmatpush.msra.mxu1 %v212_v31  ;;  %321 = vmatpush.msra.mxu3 %v298_v59  ;;  %v757_v25 = vld [vmem:[%s1210_s9] ss:$0 sm:$0xff] }
  0x42   :  { %205 = vmatpush.msra.mxu0 %v170_v28  ;;  %281 = vmatpush.msra.mxu2 %v258_v60  ;;  %v372_v28 = vlaneseq  ;;  %v759_v30 = vld [vmem:[%s1212_s11] ss:$0 sm:$0xff] }
  0x43   :  { %206 = vmatmul.f32.vlgmr.msra.gmra.mxu0 %v169_v29  ;;  %246 = vmatpush.msra.mxu1 %v211_v32  ;;  %v758_v36 = vld [vmem:[%s1208_s7] ss:$0 sm:$0xff] }
  0x44   :  { %352 = vmatpush.msrb.mxu0 %v347_v39  ;;  %322 = vmatpush.msra.mxu3 %v297_v62  ;;  %v373_v29 = vand.u32 127, %v372_v28  ;;  %v644_v28 = vld [vmem:[#allocation11 + $0x50] sm:$0xff] }
  0x45   :  { %282 = vmatpush.msra.mxu2 %v257_v63 }
  0x46   :  { %353 = vmatpush.msrb.mxu0 %v346_v41  ;;  %323 = vmatpush.msra.mxu3 %v296_v1  ;;  %vm437_vm0 = vcmp.ge.s32.totalorder %v373_v29, 16  ;;  %vm438_vm1 = vcmp.lt.s32.totalorder %v373_v29, 32  ;;  %vm499_vm3 = vcmp.ge.s32.totalorder %v373_v29, 32  ;;  %vm500_vm4 = vcmp.lt.s32.totalorder %v373_v29, 48 }
  0x47   :  { %283 = vmatpush.msra.mxu2 %v256_v2  ;;  %vm439_vm2 = vmand %vm437_vm0, %vm438_vm1  ;;  %vm561_vm6 = vcmp.ge.s32.totalorder %v373_v29, 48  ;;  %vm562_vm7 = vcmp.lt.s32.totalorder %v373_v29, 64  ;;  %vm375_vm8 = vcmp.lt.s32.totalorder %v373_v29, 16  ;;  %v643_v29 = vld [vmem:[#allocation11 + $0x48] sm:$0xff] }
  0x48   :  { %354 = vmatpush.msrb.mxu0 %v345_v43  ;;  %324 = vmatpush.msra.mxu3 %v295_v4  ;;  %v1151_v34 = vsel %vm439_vm2, 1.0, %v991_v33  ;;  %vm501_vm5 = vmand %vm499_vm3, %vm500_vm4  ;;  %v1158_v38 = vsel %vm375_vm8, 1.0, %v991_v33 }
  0x49   :  { %284 = vmatpush.msra.mxu2 %v255_v5  ;;  %v1153_v35 = vsel %vm501_vm5, 1.0, %v991_v33  ;;  %vm563_vm9 = vmand %vm561_vm6, %vm562_vm7 }
  0x4a   :  { %355 = vmatpush.msrb.mxu0 %v344_v46  ;;  %325 = vmatpush.msra.mxu3 %v294_v7  ;;  %v1160_v39 = vsel %vm563_vm9, 1.0, %v991_v33  ;;  %v639_v33 = vld [vmem:[#allocation11 + $0x28] sm:$0xff] }
  0x4b   :  { %285 = vmatpush.msra.mxu2 %v254_v8 }
  0x4c   :  { %356 = vmatpush.msrb.mxu0 %v343_v49  ;;  %326 = vmatpush.msra.mxu3 %v293_v9 }
  0x4d   :  { %286 = vmatpush.msra.mxu2 %v253_v15 }
  0x4e   :  { %357 = vmatpush.msrb.mxu0 %v342_v52  ;;  %327 = vmatpush.msra.mxu3 %v292_v12 }
  0x4f   :  { %328 = vmatmul.f32.vlgmr.msra.gmra.mxu3 %v251_v13  ;;  %287 = vmatpush.msra.mxu2 %v252_v17 }
  0x50   :  { %358 = vmatpush.msrb.mxu0 %v341_v55 }
  0x52   :  { %359 = vmatpush.msrb.mxu0 %v340_v58 }
  0x54   :  { %360 = vmatpush.msrb.mxu0 %v339_v61 }
  0x56   :  { %361 = vmatpush.msrb.mxu0 %v338_v0 }
  0x58   :  { %362 = vmatpush.msrb.mxu0 %v337_v3 }
  0x5a   :  { %363 = vmatpush.msrb.mxu0 %v336_v16 }
  0x5c   :  { %364 = vmatpush.msrb.mxu0 %v335_v18 }
  0x5e   :  { %365 = vmatpush.msrb.mxu0 %v334_v19 }
  0x60   :  { %366 = vmatpush.msrb.mxu0 %v333_v20 }
  0x62   :  { %367 = vmatpush.msrb.mxu0 %v332_v21 }
  0x63   :  { %368 = vmatmul.f32.vlgmr.msrb.gmra.mxu0 %v251_v13 }
  0xc0   :  { %v207_v10 = vpop.f32.mrf.mxu0 }
  0xc1   :  { %v208_v11 = vadd.f32 %v755_v6, %v207_v10 }
  0xc3   :  { %v210_v14 = vmax.f32 %v208_v11, 0.0 }
  0xc5   :  { %247 = vmatmul.f32.vlgmr.msra.gmra.mxu1 %v210_v14 }
  0xd2   :  { %v329_v26 = vpop.f32.mrf.mxu3 }
  0xd3   :  { %v330_v27 = vadd.f32 %v757_v25, %v329_v26  ;;  %v647_v25 = vld [vmem:[#allocation11 + $0x68] sm:$0xff]  ;;  %v646_v26 = vld [vmem:[#allocation11 + $0x60] sm:$0xff] }
  0xd5   :  { %395 = vmatpush.xpose.msrb.mxu2 %v330_v27  ;;  %582 = vmatpush.xpose.msrb.mxu1 %v330_v27 }
  0xe0   :  { %v369_v31 = vpop.f32.mrf.mxu0 }
  0xe1   :  { %v370_v32 = vadd.f32 %v759_v30, %v369_v31  ;;  %v642_v30 = vld [vmem:[#allocation11 + $0x40] sm:$0xff]  ;;  %v641_v31 = vld [vmem:[#allocation11 + $0x38] sm:$0xff] }
  0xe3   :  { %492 = vmatpush.msra.mxu0 %v370_v32  ;;  %554 = vmatpush.msrb.mxu3 %v370_v32 }
 0x142   :  { %v248_v23 = vpop.f32.mrf.mxu1 }
 0x143   :  { %v1142_v24 = vadd.f32 %v756_v22, %v248_v23  ;;  %v649_v22 = vld [vmem:[#allocation11 + $0x78] sm:$0xff]  ;;  %v648_v23 = vld [vmem:[#allocation11 + $0x70] sm:$0xff] }
 0x144   :  { %654 = vmatpush.msra.mxu3 %v649_v22 }
 0x145   :  { %288 = vmatmul.f32.vlgmr.msra.gmra.mxu2 %v1142_v24 }
 0x146   :  { %430 = vmatpush.msra.mxu2 %v370_v32  ;;  %655 = vmatpush.msra.mxu3 %v648_v23 }
 0x148   :  { %656 = vmatpush.msra.mxu3 %v647_v25 }
 0x14a   :  { %657 = vmatpush.msra.mxu3 %v646_v26 }
 0x1c8   :  { %v289_v37 = vpop.f32.mrf.mxu2 }
 0x1c9   :  { %v290_v40 = vadd.f32 %v758_v36, %v289_v37  ;;  %v638_v36 = vld [vmem:[#allocation11 + $0x20] sm:$0xff]  ;;  %v637_v37 = vld [vmem:[#allocation11 + $0x18] sm:$0xff] }
 0x1cb   :  { %v379_v41 = vmul.f32 %v1158_v38, %v290_v40  ;;  %v566_v42 = vmul.f32 %v1160_v39, %v290_v40  ;;  %v442_v53 = vmul.f32 %v1151_v34, %v290_v40  ;;  %v504_v54 = vmul.f32 %v1153_v35, %v290_v40  ;;  %v636_v40 = vld [vmem:[#allocation11 + $0x10] sm:$0xff] }
 0x1cd   :  { %396 = vmatmul.f32.vlgmr.msrb.gmra.mxu2 %v379_v41  ;;  %583 = vmatmul.f32.vlgmr.msrb.gmra.mxu1 %v566_v42  ;;  %v635_v41 = vld [vmem:[#allocation11 + $0x8] sm:$0xff]  ;;  %v634_v42 = vld [vmem:[#allocation11] sm:$0xff] }
 0x1ce   :  { %458 = vmatpush.xpose.msrb.mxu2 %v330_v27 }
 0x24a   :  { %v584_v60 = vpop.f32.mrf.mxu1 }
 0x24b   :  { %v587_v61 = vsel %vm400_vm10, %v584_v60, -inf }
 0x250   :  { %v397_v43 = vpop.f32.mrf.mxu2 }
 0x251   :  { %v401_v44 = vsel %vm400_vm10, %v397_v43, -inf }
 0x252   :  { %402 = vmax.xlane.f32.xlu0 %v401_v44  ;;  %v689_v44 = vld [vmem:[#allocation13 + $0x70] sm:$0xff] }
 0x2c5   :  { %v403_v45 = vpop.xlane.xlu0 %402 }
 0x2c6   :  { %v404_v46 = vsub.f32 %v397_v43, %v403_v45  ;;  %v690_v43 = vld [vmem:[#allocation13 + $0x78] sm:$0xff]  ;;  %v688_v45 = vld [vmem:[#allocation13 + $0x68] sm:$0xff] }
 0x2c7   :  { %695 = vmatpush.msra.mxu1 %v690_v43 }
 0x2c8   :  { %v405_v47 = vmul.f32 1.442695, %v404_v46  ;;  %v687_v46 = vld [vmem:[#allocation13 + $0x60] sm:$0xff] }
 0x2c9   :  { %696 = vmatpush.msra.mxu1 %v689_v44 }
 0x2ca   :  { %764 = vpow2.f32 %v405_v47  ;;  %v686_v47 = vld [vmem:[#allocation13 + $0x58] sm:$0xff] }
 0x2cb   :  { %697 = vmatpush.msra.mxu1 %v688_v45 }
 0x2cd   :  { %698 = vmatpush.msra.mxu1 %v687_v46 }
 0x2cf   :  { %699 = vmatpush.msra.mxu1 %v686_v47 }
 0x2d0   :  { %v765_v48 = vpop.eup %764 }
 0x2d1   :  { %v407_v49 = vsel %vm400_vm10, %v765_v48, 0.0 }
 0x2d2   :  { %408 = vadd.xlane.f32.xlu0 %v407_v49  ;;  %v684_v49 = vld [vmem:[#allocation13 + $0x48] sm:$0xff] }
 0x345   :  { %v409_v50 = vpop.xlane.xlu0 %408 }
 0x346   :  { %766 = vrcp.f32 %v409_v50  ;;  %v683_v50 = vld [vmem:[#allocation13 + $0x40] sm:$0xff] }
 0x34c   :  { %v767_v51 = vpop.eup %766 }
 0x34d   :  { %v411_v52 = vmul.f32 %v767_v51, %v765_v48  ;;  %v685_v48 = vld [vmem:[#allocation13 + $0x50] sm:$0xff] }
 0x34e   :  { %700 = vmatpush.msra.mxu1 %v685_v48 }
 0x34f   :  { %737 = vmatmul.msk.f32.vlgmr.msra.gmra.mxu2 %vm400_vm10, %v411_v52  ;;  %v682_v52 = vld [vmem:[#allocation13 + $0x38] sm:$0xff] }
 0x350   :  { %520 = vmatpush.xpose.msra.mxu2 %v330_v27  ;;  %v645_v27 = vld [vmem:[#allocation11 + $0x58] sm:$0xff]  ;;  %701 = vmatpush.msra.mxu1 %v684_v49 }
 0x351   :  { %658 = vmatpush.msra.mxu3 %v645_v27 }
 0x352   :  { %702 = vmatpush.msra.mxu1 %v683_v50 }
 0x353   :  { %659 = vmatpush.msra.mxu3 %v644_v28 }
 0x354   :  { %703 = vmatpush.msra.mxu1 %v682_v52 }
 0x355   :  { %660 = vmatpush.msra.mxu3 %v643_v29 }
 0x357   :  { %459 = vmatmul.f32.vlgmr.msrb.gmra.mxu2 %v442_v53  ;;  %661 = vmatpush.msra.mxu3 %v642_v30 }
 0x358   :  { %616 = vmatpush.msrb.mxu2 %v370_v32  ;;  %v640_v32 = vld [vmem:[#allocation11 + $0x30] sm:$0xff] }
 0x359   :  { %662 = vmatpush.msra.mxu3 %v641_v31 }
 0x35b   :  { %663 = vmatpush.msra.mxu3 %v640_v32 }
 0x35d   :  { %664 = vmatpush.msra.mxu3 %v639_v33 }
 0x35f   :  { %521 = vmatmul.f32.vlgmr.msra.gmra.mxu2 %v504_v54  ;;  %665 = vmatpush.msra.mxu3 %v638_v36 }
 0x361   :  { %666 = vmatpush.msra.mxu3 %v637_v37 }
 0x363   :  { %667 = vmatpush.msra.mxu3 %v636_v40 }
 0x365   :  { %668 = vmatpush.msra.mxu3 %v635_v41 }
 0x367   :  { %669 = vmatpush.msra.mxu3 %v634_v42 }
 0x3d2   :  { %v1169_v55 = vpop.f32.mrf.mxu2 }
 0x3da   :  { %v460_v56 = vpop.f32.mrf.mxu2 }
 0x3db   :  { %v463_v57 = vsel %vm400_vm10, %v460_v56, -inf }
 0x3dc   :  { %464 = vmax.xlane.f32.xlu2 %v463_v57  ;;  %v435_v57 = vmul.f32 %v1158_v38, %v1169_v55 }
 0x3e2   :  { %v522_v58 = vpop.f32.mrf.mxu2 }
 0x3e3   :  { %v525_v59 = vsel %vm400_vm10, %v522_v58, -inf }
 0x3e4   :  { %526 = vmax.xlane.f32.xlu1 %v525_v59  ;;  %v680_v59 = vld [vmem:[#allocation13 + $0x28] sm:$0xff] }
 0x3ec   :  { %588 = vmax.xlane.f32.xlu1 %v587_v61  ;;  %v679_v61 = vld [vmem:[#allocation13 + $0x20] sm:$0xff] }
 0x44f   :  { %v465_v62 = vpop.xlane.xlu2 %464 }
 0x450   :  { %v466_v63 = vsub.f32 %v460_v56, %v465_v62  ;;  %v681_v56 = vld [vmem:[#allocation13 + $0x30] sm:$0xff] }
 0x451   :  { %704 = vmatpush.msra.mxu1 %v681_v56 }
 0x452   :  { %v467_v0 = vmul.f32 1.442695, %v466_v63 }
 0x453   :  { %705 = vmatpush.msra.mxu1 %v680_v59 }
 0x454   :  { %768 = vpow2.f32 %v467_v0 }
 0x455   :  { %706 = vmatpush.msra.mxu1 %v679_v61 }
 0x457   :  { %v527_v1 = vpop.xlane.xlu1 %526 }
 0x458   :  { %v528_v2 = vsub.f32 %v522_v58, %v527_v1  ;;  %v678_v1 = vld [vmem:[#allocation13 + $0x18] sm:$0xff] }
 0x459   :  { %707 = vmatpush.msra.mxu1 %v678_v1 }
 0x45a   :  { %v769_v3 = vpop.eup %768  ;;  %v529_v4 = vmul.f32 1.442695, %v528_v2 }
 0x45b   :  { %v469_v5 = vsel %vm400_vm10, %v769_v3, 0.0 }
 0x45c   :  { %770 = vpow2.f32 %v529_v4  ;;  %470 = vadd.xlane.f32.xlu1 %v469_v5  ;;  %v677_v4 = vld [vmem:[#allocation13 + $0x10] sm:$0xff]  ;;  %v675_v5 = vld [vmem:[#allocation13] sm:$0xff] }
 0x45d   :  { %708 = vmatpush.msra.mxu1 %v677_v4 }
 0x45f   :  { %v589_v6 = vpop.xlane.xlu1 %588 }
 0x460   :  { %v590_v7 = vsub.f32 %v584_v60, %v589_v6  ;;  %v762_v6 = vld [vmem:[%s1216_s15] ss:$0 sm:$0xff] }
 0x462   :  { %v771_v8 = vpop.eup %770  ;;  %v591_v9 = vmul.f32 1.442695, %v590_v7 }
 0x463   :  { %v531_v10 = vsel %vm400_vm10, %v771_v8, 0.0 }
 0x464   :  { %772 = vpow2.f32 %v591_v9  ;;  %532 = vadd.xlane.f32.xlu2 %v531_v10  ;;  %v763_v9 = vld [vmem:[%s1218_s17] ss:$0 sm:$0xff] }
 0x46a   :  { %v773_v11 = vpop.eup %772 }
 0x46b   :  { %v593_v12 = vsel %vm400_vm10, %v773_v11, 0.0 }
 0x46c   :  { %594 = vadd.xlane.f32.xlu0 %v593_v12 }
 0x4cf   :  { %v471_v13 = vpop.xlane.xlu1 %470 }
 0x4d0   :  { %774 = vrcp.f32 %v471_v13 }
 0x4d6   :  { %v775_v14 = vpop.eup %774 }
 0x4d7   :  { %v473_v15 = vmul.f32 %v775_v14, %v769_v3  ;;  %v533_v16 = vpop.xlane.xlu2 %532 }
 0x4d8   :  { %776 = vrcp.f32 %v533_v16 }
 0x4d9   :  { %739 = vmatmul.msk.f32.vlgmr.msra.gmra.mxu0 %vm400_vm10, %v473_v15 }
 0x4de   :  { %v777_v17 = vpop.eup %776 }
 0x4df   :  { %v535_v18 = vmul.f32 %v777_v17, %v771_v8  ;;  %v595_v19 = vpop.xlane.xlu0 %594 }
 0x4e0   :  { %778 = vrcp.f32 %v595_v19 }
 0x4e1   :  { %741 = vmatmul.msk.f32.vlgmr.msrb.gmra.mxu3 %vm400_vm10, %v535_v18 }
 0x4e6   :  { %v779_v20 = vpop.eup %778 }
 0x4e7   :  { %v597_v21 = vmul.f32 %v779_v20, %v773_v11 }
 0x4e9   :  { %743 = vmatmul.msk.f32.vlgmr.msrb.gmra.mxu2 %vm400_vm10, %v597_v21 }
 0x556   :  { %v494_v51 = vpop.f32.mrf.mxu0 }
 0x557   :  { %v497_v54 = vmul.f32 %v1151_v34, %v494_v51  ;;  %v760_v34 = vld [vmem:[%s1213_s12] ss:$0 sm:$0xff] }
 0x559   :  { %v498_v60 = vadd.f32 %v497_v54, %v435_v57 }
 0x564   :  { %v556_v53 = vpop.f32.mrf.mxu3 }
 0x565   :  { %v559_v58 = vmul.f32 %v1153_v35, %v556_v53  ;;  %v761_v35 = vld [vmem:[%s1214_s13] ss:$0 sm:$0xff]  ;;  %s992_s13 = smov [#allocation14]  }
 0x566   :  { %s721_s30 = sshll.u32 %s992_s13, 4  ;;  %s722_s30 = int_to_ptr.vmem [resolvable:$true] %s721_s30 }
 0x567   :  { %v560_v63 = vadd.f32 %v559_v58, %v498_v60 }
 0x56c   :  { %v618_v62 = vpop.f32.mrf.mxu2 }
 0x56d   :  { %v621_v0 = vmul.f32 %v1160_v39, %v618_v62  ;;  %v676_v39 = vld [vmem:[#allocation13 + $0x8] sm:$0xff] }
 0x56e   :  { %709 = vmatpush.msra.mxu1 %v676_v39 }
 0x56f   :  { %v622_v2 = vadd.f32 %v621_v0, %v560_v63 }
 0x570   :  { %710 = vmatpush.msra.mxu1 %v675_v5 }
 0x571   :  { %v623_v38 = vadd.f32 %v622_v2, %v1142_v24 }
 0x573   :  { %v628_v55 = vmul.f32 %v760_v34, %v623_v38 }
 0x575   :  { %v633_v3 = vadd.f32 %v761_v35, %v628_v55 }
 0x577   :  { %670 = vmatmul.f32.vlgmr.msra.gmra.mxu3 %v633_v3 }
 0x5fa   :  { %v671_v7 = vpop.f32.mrf.mxu3 }
 0x5fb   :  { %v672_v8 = vadd.f32 %v762_v6, %v671_v7 }
 0x5fd   :  { %v674_v24 = vmax.f32 %v672_v8, 0.0 }
 0x5ff   :  { %711 = vmatmul.f32.vlgmr.msra.gmra.mxu1 %v674_v24 }
 0x67c   :  { %v712_v10 = vpop.f32.mrf.mxu1 }
 0x67d   :  { %v713_v11 = vadd.f32 %v763_v9, %v712_v10 }
 0x67f   :  { %715 = vst [vmem:[#allocation14] sm:$0xff] %v713_v11 }
 0x680   :  { %726 = dma.vmem_to_hbm [thread:$0]  %s722_s30, 128, %s724_s16, [#allocation4]  }
 0x681   :  { %980 = dma.done.wait [#allocation4], 128  }
 0x682   :  { %981 = vsyncadd [#allocation4], 4294967168 }
 0x683   :  { %731 = vsyncpa [#allocation3], 1 }
 0x684   :  { %732 = vsyncpa [#allocation6], 1 }
 0x685   :  { %733 = vsyncpa [#allocation9], 1 }
 0x686   :  { %734 = vsyncpa [#allocation12], 1 }
 0x687   :  { %735 = vsyncpa [#allocation4], 1 }

</bundles_post_ra>
